<compile_context>
chip_gen: v6e
topology: v6e:2x2x1
jax: 0.10.0
libtpu: 0.0.40
codegen_flags: <defaults>
</compile_context>

<pallas_src>
import jax
import jax.numpy as jnp
from jax.experimental import pallas as pl
from jax.experimental.pallas import tpu as pltpu


def _round_up(x: int, m: int) -> int:
    return (x + m - 1) // m * m


def _pick_tile_b(bsz: int):
    """Return (tb, b_pad). Prefer tb | bsz (no padding) and >= 2 B tiles (megacore)."""
    cap = min(bsz, 256)
    single = None
    for tb in range(cap - cap % 8, 7, -8):
        if bsz % tb == 0:
            if bsz // tb >= 2:
                return tb, bsz
            if single is None:
                single = tb
    if single is not None:
        return single, bsz
    # bsz is not a multiple of 8: pad the batch (padded rows are masked via label = -1).
    b_pad = _round_up(bsz, 8)
    tb = min(128, b_pad)
    while b_pad % tb:
        tb -= 8
    return tb, b_pad


def _pick_tile_d(d: int, itemsize: int):
    """Return (td, d_pad). td is a divisor of d_pad; padding only in the rare unaligned case."""
    cap = {4: 2048, 2: 4096, 1: 8192}.get(itemsize, 2048)
    if d <= cap:
        return d, d                      # single resident D tile, no padding
    if d % 128 == 0:
        for td in range(cap - cap % 128, 127, -128):
            if d % td == 0:
                return td, d             # always hits (128 divides d)
    td = cap - cap % 128                 # d > cap and not 128-aligned: pad (rare)
    return td, _round_up(d, td)


def classifier_kernel(x_ref, w_ref, b_ref, lab_ref, logits_ref, stats_ref):
    """Grid = (num_B_tiles, num_D_tiles); D (axis 1) is the reduction axis.

    Steady state: one (TB, TD) x tile -> MXU accumulate into the resident logits block.
    Epilogue (bias, log-softmax CE, argmax accuracy, per-tile sums) only on the last D step.
    """
    d_step = pl.program_id(1)
    n_d = pl.num_programs(1)
    tb, td = x_ref.shape

    @pl.when(d_step == 0)
    def _init():
        logits_ref[...] = jnp.zeros_like(logits_ref)

    # Cast AFTER the DMA so the HBM->VMEM stream stays in the input's native dtype.
    x = x_ref[...]
    if jnp.issubdtype(x_ref.dtype, jnp.integer):
        x = x.astype(jnp.bfloat16)       # exact for uint8/int8; native MXU dtype

    # w is fully resident in VMEM: slice the current TD chunk in place (no per-step DMA).
    start = d_step * td
    if td % 128 == 0:
        start = pl.multiple_of(start, 128)
    w_blk = w_ref[pl.ds(start, td), :]

    logits_ref[...] += jnp.dot(x, w_blk, preferred_element_type=jnp.float32)

    @pl.when(d_step == n_d - 1)
    def _finalize():
        logits = logits_ref[...] + b_ref[...]                           # [TB, K] f32
        logits_ref[...] = logits

        k = logits.shape[1]
        lab = lab_ref[...]                                              # [TB, 1] int32 (-1 = pad)
        valid = lab >= 0
        cls_iota = jax.lax.broadcasted_iota(jnp.int32, logits.shape, 1)

        # log-softmax cross-entropy with integer labels: ce = lse - logits[label]
        m = jnp.max(logits, axis=-1, keepdims=True)                     # [TB, 1]
        lse = m + jnp.log(jnp.sum(jnp.exp(logits - m), axis=-1, keepdims=True))
        picked = jnp.sum(jnp.where(cls_iota == lab, logits, 0.0),
                         axis=-1, keepdims=True)                        # [TB, 1]
        ce = lse - picked

        # accuracy: argmax(logits) == label (first index on ties)
        pred_idx = jnp.min(jnp.where(logits == m, cls_iota, k),
                           axis=-1, keepdims=True)                      # [TB, 1]
        corr = (pred_idx == lab).astype(jnp.float32)

        ce_sum = jnp.sum(jnp.where(valid, ce, 0.0))
        corr_sum = jnp.sum(jnp.where(valid, corr, 0.0))

        # Dense (8, 128) per-B-tile stats block: [0,0] = sum CE, [1,0] = sum correct.
        r = jax.lax.broadcasted_iota(jnp.int32, stats_ref.shape, 0)
        c = jax.lax.broadcasted_iota(jnp.int32, stats_ref.shape, 1)
        stats_ref[...] = (jnp.where((r == 0) & (c == 0), ce_sum, 0.0)
                          + jnp.where((r == 1) & (c == 0), corr_sum, 0.0))


@jax.jit
def classifier_forward(image, targets_onehot, w, bias):
    """image: [B, C, H, W] (native dtype); targets_onehot: [B, K]; w: [D, K]; bias: [K]."""
    bsz = image.shape[0]
    d, k = w.shape

    x = image.reshape(bsz, -1)                               # no dtype upcast here
    labels = jnp.argmax(targets_onehot, axis=-1).astype(jnp.int32)
    # TODO(synk): assumes hard (one-hot) targets, matching accuracy_with_logits semantics;
    #             soft targets would need the full p * log_softmax CE instead of label CE.

    # ---- MXU compute dtype: keep f32 as f32, everything else runs the bf16 MXU path.
    if x.dtype == jnp.float32:
        w_k = w.astype(jnp.float32)
    else:
        w_k = w.astype(jnp.bfloat16)
        if not (x.dtype == jnp.bfloat16 or jnp.issubdtype(x.dtype, jnp.integer)):
            x = x.astype(jnp.bfloat16)

    # ---- tile sizes (big D tiles to amortize the ~0.35 us/step overhead; no padding in the
    #      common case: tb | b_pad and td | d_pad are chosen from divisors).
    tb, b_pad = _pick_tile_b(bsz)
    td, d_pad = _pick_tile_d(d, x.dtype.itemsize)
    nb = b_pad // tb
    nd = d_pad // td

    if b_pad > bsz or d_pad > d:
        x = jnp.pad(x, ((0, b_pad - bsz), (0, d_pad - d)))
    if d_pad > d:
        w_k = jnp.pad(w_k, ((0, d_pad - d), (0, 0)))
    lab_p = labels
    if b_pad > bsz:
        lab_p = jnp.pad(labels, (0, b_pad - bsz), constant_values=-1)   # -1 marks padded rows
    lab_p = lab_p.reshape(b_pad, 1)
    b_p = bias.astype(jnp.float32).reshape(1, k)

    # ---- VMEM budget: x double-buffered + resident w + small blocks; explicit limit so the
    #      v5e 16 MiB scoped-VMEM default never bites when tiles are enlarged.
    vmem_need = (2 * tb * td * x.dtype.itemsize
                 + 2 * d_pad * k * w_k.dtype.itemsize
                 + 2 * (tb * k + tb + k + 8 * 128) * 4)
    vmem_limit = int(min(max(2 * vmem_need, 16 << 20), 48 << 20))

    cost = pl.CostEstimate(
        flops=2 * b_pad * d_pad * k,
        transcendentals=b_pad * k,
        bytes_accessed=int(b_pad * d_pad * x.dtype.itemsize          # x streamed once
                           + d_pad * k * w_k.dtype.itemsize          # w resident: read once
                           + b_pad * k * 4 + b_pad * 4 + k * 4
                           + nb * 8 * 128 * 4),
    )

    grid_spec = pltpu.PrefetchScalarGridSpec(
        num_scalar_prefetch=0,
        grid=(nb, nd),
        in_specs=[
            pl.BlockSpec((tb, td), lambda i, j: (i, j)),     # x: streamed, double-buffered
            pl.BlockSpec((d_pad, k), lambda i, j: (0, 0)),   # w: fully resident in VMEM
            pl.BlockSpec((1, k), lambda i, j: (0, 0)),       # bias: resident
            pl.BlockSpec((tb, 1), lambda i, j: (i, 0)),      # int32 labels per B tile
        ],
        out_specs=(
            pl.BlockSpec((tb, k), lambda i, j: (i, 0)),      # logits (doubles as accumulator)
            pl.BlockSpec((8, 128), lambda i, j: (i, 0)),     # per-B-tile [ce_sum, correct_sum]
        ),
    )

    logits_p, stats = pl.pallas_call(
        classifier_kernel,
        grid_spec=grid_spec,
        out_shape=(
            jax.ShapeDtypeStruct((b_pad, k), jnp.float32),
            jax.ShapeDtypeStruct((nb * 8, 128), jnp.float32),
        ),
        compiler_params=pltpu.CompilerParams(
            # B tiles are independent -> shard across TensorCores on v7x;
            # D reduces into resident output blocks -> arbitrary.
            dimension_semantics=("parallel", "arbitrary"),
            vmem_limit_bytes=vmem_limit),
        cost_estimate=cost,
    )(x, w_k, b_p, lab_p)

    logits = logits_p[:bsz]
    loss = jnp.sum(stats[0::8, 0]) / bsz
    acc = jnp.sum(stats[1::8, 0]) / bsz
    return logits, loss, acc


if __name__ == "__main__":
    # Small shapes consistent with the module: two-class classification.
    B, C, H, W = 2, 4, 16, 16
    K = 2                       # two classes
    D = C * H * W               # 1024

    key = jax.random.PRNGKey(0)
    k_img, k_w, k_b, k_t = jax.random.split(key, 4)

    image = jax.random.normal(k_img, (B, C, H, W), dtype=jnp.float32)
    w_param = jax.random.normal(k_w, (D, K), dtype=jnp.float32) * 0.02
    b_param = jax.random.normal(k_b, (K,), dtype=jnp.float32) * 0.02
    labels = jax.random.randint(k_t, (B,), 0, K)
    targets = jax.nn.one_hot(labels, K, dtype=jnp.float32)

    logits, loss, acc = classifier_forward(image, targets, w_param, b_param)
    jax.block_until_ready((logits, loss, acc))

    # Reference in plain JAX (same math as cross_entropy_with_logits / accuracy_with_logits).
    ref_logits = image.reshape(B, -1) @ w_param + b_param
    ref_lp = jax.nn.log_softmax(ref_logits, axis=-1)
    ref_loss = -jnp.mean(jnp.sum(targets * ref_lp, axis=-1))
    ref_acc = jnp.mean((jnp.argmax(ref_logits, -1) == jnp.argmax(targets, -1)).astype(jnp.float32))
    assert jnp.allclose(logits, ref_logits, atol=5e-4), "logits mismatch"
    assert jnp.allclose(loss, ref_loss, atol=1e-4), "loss mismatch"
    assert jnp.allclose(acc, ref_acc, atol=1e-6), "acc mismatch"

    # Mirrors the PyTorch return: (loss, metrics)
    metrics = {"loss": float(loss), "acc": float(acc)}
    print("KERNEL_OK")
</pallas_src>

<mosaic_0001>
module attributes {stable_mosaic.version = 11 : i64} {
  func.func @classifier_kernel(%arg0: i32, %arg1: i32, %arg2: memref<8x1024xf32, #tpu.memory_space<vmem>>, %arg3: memref<1024x2xf32, #tpu.memory_space<vmem>>, %arg4: memref<1x2xf32, #tpu.memory_space<vmem>>, %arg5: memref<8x1xi32, #tpu.memory_space<vmem>>, %arg6: memref<8x2xf32, #tpu.memory_space<vmem>>, %arg7: memref<8x128xf32, #tpu.memory_space<vmem>>) attributes {dimension_semantics = [#tpu.dimension_semantics<parallel>, #tpu.dimension_semantics<arbitrary>], iteration_bounds = array<i64: 1, 1>, scalar_prefetch = 0 : i64, scratch_operands = 0 : i64, tpu.core_type = #tpu.core_type<tc>, window_params = [{transform_indices = @transform_0, window_bounds = array<i64: 8, 1024>}, {pipeline_mode = #tpu.pipeline_mode<synchronous>, transform_indices = @transform_1, window_bounds = array<i64: 1024, 2>}, {pipeline_mode = #tpu.pipeline_mode<synchronous>, transform_indices = @transform_2, window_bounds = array<i64: 1, 2>}, {transform_indices = @transform_3, window_bounds = array<i64: 8, 1>}, {transform_indices = @transform_4, window_bounds = array<i64: 8, 2>}, {transform_indices = @transform_5, window_bounds = array<i64: 8, 128>}]} {
    %c0_i32 = arith.constant 0 : i32
    %0 = arith.cmpi eq, %arg1, %c0_i32 : i32
    %1 = arith.extui %0 : i1 to i32
    %c0_i32_0 = arith.constant 0 : i32
    %2 = arith.cmpi ne, %1, %c0_i32_0 : i32
    scf.if %2 {
      %cst_9 = arith.constant 0.000000e+00 : f32
      %15 = vector.broadcast %cst_9 : f32 to vector<8x2xf32>
      %c0_10 = arith.constant 0 : index
      %c0_11 = arith.constant 0 : index
      %16 = vector.load %arg6[%c0_10, %c0_11] : memref<8x2xf32, #tpu.memory_space<vmem>>, vector<8x2xf32>
      tpu.vector_store %arg6[%c0_10, %c0_11], %15 {strides = array<i32>} : memref<8x2xf32, #tpu.memory_space<vmem>>, vector<8x2xf32>,
    } else {
    }
    %c0 = arith.constant 0 : index
    %c0_1 = arith.constant 0 : index
    %3 = vector.load %arg2[%c0, %c0_1] : memref<8x1024xf32, #tpu.memory_space<vmem>>, vector<8x1024xf32>
    %c1024_i32 = arith.constant 1024 : i32
    %4 = arith.muli %arg1, %c1024_i32 : i32
    %5 = tpu.assume_multiple %4, 128 : i32
    %6 = arith.index_cast %5 : i32 to index
    %c0_2 = arith.constant 0 : index
    %7 = vector.load %arg3[%6, %c0_2] : memref<1024x2xf32, #tpu.memory_space<vmem>>, vector<1024x2xf32>
    %c0_3 = arith.constant 0 : index
    %c0_4 = arith.constant 0 : index
    %8 = vector.load %arg6[%c0_3, %c0_4] : memref<8x2xf32, #tpu.memory_space<vmem>>, vector<8x2xf32>
    %cst = arith.constant dense<0.000000e+00> : vector<8x2xf32>
    %9 = tpu.matmul %3, %7, %cst {dimension_numbers = #tpu.dot_dimension_numbers<[1], [0], [0], [1], [0, 0, 1, 1], [], []>} : vector<8x1024xf32>, vector<1024x2xf32>, vector<8x2xf32> -> vector<8x2xf32>
    %10 = arith.addf %8, %9 : vector<8x2xf32>
    %c0_5 = arith.constant 0 : index
    %c0_6 = arith.constant 0 : index
    %11 = vector.load %arg6[%c0_5, %c0_6] : memref<8x2xf32, #tpu.memory_space<vmem>>, vector<8x2xf32>
    tpu.vector_store %arg6[%c0_5, %c0_6], %10 {strides = array<i32>} : memref<8x2xf32, #tpu.memory_space<vmem>>, vector<8x2xf32>,
    %c0_i32_7 = arith.constant 0 : i32
    %12 = arith.cmpi eq, %arg1, %c0_i32_7 : i32
    %13 = arith.extui %12 : i1 to i32
    %c0_i32_8 = arith.constant 0 : i32
    %14 = arith.cmpi ne, %13, %c0_i32_8 : i32
    scf.if %14 {
      %c0_9 = arith.constant 0 : index
      %c0_10 = arith.constant 0 : index
      %15 = vector.load %arg6[%c0_9, %c0_10] : memref<8x2xf32, #tpu.memory_space<vmem>>, vector<8x2xf32>
      %c0_11 = arith.constant 0 : index
      %c0_12 = arith.constant 0 : index
      %16 = vector.load %arg4[%c0_11, %c0_12] : memref<1x2xf32, #tpu.memory_space<vmem>>, vector<1x2xf32>
      %17 = vector.broadcast %16 : vector<1x2xf32> to vector<8x2xf32>
      %18 = arith.addf %15, %17 : vector<8x2xf32>
      %c0_13 = arith.constant 0 : index
      %c0_14 = arith.constant 0 : index
      %19 = vector.load %arg6[%c0_13, %c0_14] : memref<8x2xf32, #tpu.memory_space<vmem>>, vector<8x2xf32>
      tpu.vector_store %arg6[%c0_13, %c0_14], %18 {strides = array<i32>} : memref<8x2xf32, #tpu.memory_space<vmem>>, vector<8x2xf32>,
      %c0_15 = arith.constant 0 : index
      %c0_16 = arith.constant 0 : index
      %20 = vector.load %arg5[%c0_15, %c0_16] : memref<8x1xi32, #tpu.memory_space<vmem>>, vector<8x1xi32>
      %c0_i32_17 = arith.constant 0 : i32
      %21 = vector.broadcast %c0_i32_17 : i32 to vector<8x1xi32>
      %22 = arith.cmpi sge, %20, %21 : vector<8x1xi32>
      %23 = tpu.iota {dimensions = array<i32: 1>} : vector<8x2xi32>
      %cst_18 = arith.constant dense<0xFF800000> : vector<8xf32>
      %24 = vector.multi_reduction <maximumf>, %18, %cst_18 [1] : vector<8x2xf32> to vector<8xf32>
      %25 = vector.shape_cast %24 : vector<8xf32> to vector<8x1xf32>
      %26 = vector.broadcast %25 : vector<8x1xf32> to vector<8x2xf32>
      %27 = arith.subf %18, %26 : vector<8x2xf32>
      %28 = math.exp %27 : vector<8x2xf32>
      %cst_19 = arith.constant dense<0.000000e+00> : vector<8xf32>
      %29 = vector.multi_reduction <add>, %28, %cst_19 [1] : vector<8x2xf32> to vector<8xf32>
      %30 = vector.shape_cast %29 : vector<8xf32> to vector<8x1xf32>
      %31 = math.log %30 : vector<8x1xf32>
      %32 = arith.addf %25, %31 : vector<8x1xf32>
      %33 = vector.broadcast %20 : vector<8x1xi32> to vector<8x2xi32>
      %34 = arith.cmpi eq, %23, %33 : vector<8x2xi32>
      %cst_20 = arith.constant 0.000000e+00 : f32
      %35 = vector.broadcast %cst_20 : f32 to vector<8x2xf32>
      %36 = arith.select %34, %18, %35 : vector<8x2xi1>, vector<8x2xf32>
      %cst_21 = arith.constant dense<0.000000e+00> : vector<8xf32>
      %37 = vector.multi_reduction <add>, %36, %cst_21 [1] : vector<8x2xf32> to vector<8xf32>
      %38 = vector.shape_cast %37 : vector<8xf32> to vector<8x1xf32>
      %39 = arith.subf %32, %38 : vector<8x1xf32>
      %40 = vector.broadcast %25 : vector<8x1xf32> to vector<8x2xf32>
      %41 = arith.cmpf oeq, %18, %40 : vector<8x2xf32>
      %c2_i32 = arith.constant 2 : i32
      %42 = vector.broadcast %c2_i32 : i32 to vector<8x2xi32>
      %43 = arith.select %41, %23, %42 : vector<8x2xi1>, vector<8x2xi32>
      %cst_22 = arith.constant dense<2147483647> : vector<8xi32>
      %44 = vector.multi_reduction <minsi>, %43, %cst_22 [1] : vector<8x2xi32> to vector<8xi32>
      %45 = vector.shape_cast %44 : vector<8xi32> to vector<8x1xi32>
      %46 = arith.cmpi eq, %45, %20 : vector<8x1xi32>
      %47 = arith.extui %46 : vector<8x1xi1> to vector<8x1xi32>
      %48 = arith.sitofp %47 : vector<8x1xi32> to vector<8x1xf32>
      %cst_23 = arith.constant 0.000000e+00 : f32
      %49 = vector.broadcast %cst_23 : f32 to vector<8x1xf32>
      %50 = arith.select %22, %39, %49 : vector<8x1xi1>, vector<8x1xf32>
      %51 = vector.shape_cast %50 : vector<8x1xf32> to vector<1x8x1xf32>
      %cst_24 = arith.constant dense<0.000000e+00> : vector<1xf32>
      %52 = vector.multi_reduction <add>, %51, %cst_24 [1, 2] : vector<1x8x1xf32> to vector<1xf32>
      %53 = vector.shape_cast %52 : vector<1xf32> to vector<1x1x1xf32>
      %54 = vector.extract %53[0, 0, 0] : f32 from vector<1x1x1xf32>
      %cst_25 = arith.constant 0.000000e+00 : f32
      %55 = vector.broadcast %cst_25 : f32 to vector<8x1xf32>
      %56 = arith.select %22, %48, %55 : vector<8x1xi1>, vector<8x1xf32>
      %57 = vector.shape_cast %56 : vector<8x1xf32> to vector<1x8x1xf32>
      %cst_26 = arith.constant dense<0.000000e+00> : vector<1xf32>
      %58 = vector.multi_reduction <add>, %57, %cst_26 [1, 2] : vector<1x8x1xf32> to vector<1xf32>
      %59 = vector.shape_cast %58 : vector<1xf32> to vector<1x1x1xf32>
      %60 = vector.extract %59[0, 0, 0] : f32 from vector<1x1x1xf32>
      %61 = tpu.iota {dimensions = array<i32: 0>} : vector<8x128xi32>
      %62 = tpu.iota {dimensions = array<i32: 1>} : vector<8x128xi32>
      %c0_i32_27 = arith.constant 0 : i32
      %63 = vector.broadcast %c0_i32_27 : i32 to vector<8x128xi32>
      %64 = arith.cmpi eq, %61, %63 : vector<8x128xi32>
      %c0_i32_28 = arith.constant 0 : i32
      %65 = vector.broadcast %c0_i32_28 : i32 to vector<8x128xi32>
      %66 = arith.cmpi eq, %62, %65 : vector<8x128xi32>
      %67 = arith.andi %64, %66 : vector<8x128xi1>
      %cst_29 = arith.constant 0.000000e+00 : f32
      %68 = vector.broadcast %54 : f32 to vector<8x128xf32>
      %69 = vector.broadcast %cst_29 : f32 to vector<8x128xf32>
      %70 = arith.select %67, %68, %69 : vector<8x128xi1>, vector<8x128xf32>
      %c1_i32 = arith.constant 1 : i32
      %71 = vector.broadcast %c1_i32 : i32 to vector<8x128xi32>
      %72 = arith.cmpi eq, %61, %71 : vector<8x128xi32>
      %c0_i32_30 = arith.constant 0 : i32
      %73 = vector.broadcast %c0_i32_30 : i32 to vector<8x128xi32>
      %74 = arith.cmpi eq, %62, %73 : vector<8x128xi32>
      %75 = arith.andi %72, %74 : vector<8x128xi1>
      %cst_31 = arith.constant 0.000000e+00 : f32
      %76 = vector.broadcast %60 : f32 to vector<8x128xf32>
      %77 = vector.broadcast %cst_31 : f32 to vector<8x128xf32>
      %78 = arith.select %75, %76, %77 : vector<8x128xi1>, vector<8x128xf32>
      %79 = arith.addf %70, %78 : vector<8x128xf32>
      %c0_32 = arith.constant 0 : index
      %c0_33 = arith.constant 0 : index
      %80 = vector.load %arg7[%c0_32, %c0_33] : memref<8x128xf32, #tpu.memory_space<vmem>>, vector<8x128xf32>
      tpu.vector_store %arg7[%c0_32, %c0_33], %79 {strides = array<i32>} : memref<8x128xf32, #tpu.memory_space<vmem>>, vector<8x128xf32>,
    } else {
    }
    return
  }
  func.func @transform_0(%arg0: i32, %arg1: i32) -> (i32, i32) {
    %c0_i32 = arith.constant 0 : i32
    return %arg0, %arg1 : i32, i32
  }
  func.func @transform_1(%arg0: i32, %arg1: i32) -> (i32, i32) {
    %c0_i32 = arith.constant 0 : i32
    %c0_i32_0 = arith.constant 0 : i32
    %c0_i32_1 = arith.constant 0 : i32
    return %c0_i32, %c0_i32_0 : i32, i32
  }
  func.func @transform_2(%arg0: i32, %arg1: i32) -> (i32, i32) {
    %c0_i32 = arith.constant 0 : i32
    %c0_i32_0 = arith.constant 0 : i32
    %c0_i32_1 = arith.constant 0 : i32
    return %c0_i32, %c0_i32_0 : i32, i32
  }
  func.func @transform_3(%arg0: i32, %arg1: i32) -> (i32, i32) {
    %c0_i32 = arith.constant 0 : i32
    %c0_i32_0 = arith.constant 0 : i32
    return %arg0, %c0_i32 : i32, i32
  }
  func.func @transform_4(%arg0: i32, %arg1: i32) -> (i32, i32) {
    %c0_i32 = arith.constant 0 : i32
    %c0_i32_0 = arith.constant 0 : i32
    return %arg0, %c0_i32 : i32, i32
  }
  func.func @transform_5(%arg0: i32, %arg1: i32) -> (i32, i32) {
    %c0_i32 = arith.constant 0 : i32
    %c0_i32_0 = arith.constant 0 : i32
    return %arg0, %c0_i32 : i32, i32
  }
}

</mosaic_0001>

<bundles_post_ra>
// kernel: classifier_forward.1
= control target key start
LH: loop header
LB: loop body
LE: loop exit
PB: predicated region body
PF: predicated region fallthrough
CT: control target
= control target key end

     0   :  { %v703_v3 = vmov 0   ;;  %vm23_vm0 = vcmask 15360   ;;  %vm506_vm5 = vcmask 7168   ;;  %s1188_s1 = inlined_call_operand.vmem [shape: f32[1024,2], index: 1, kind: input, shape index: {}]   ;;  %s1189_s0 = inlined_call_operand.vmem [shape: f32[8,1024], index: 0, kind: input, shape index: {}]   ;;  %s1190_s3 = inlined_call_operand.vmem [shape: s32[8,1], index: 3, kind: input, shape index: {}]   ;;  %s1191_s4 = inlined_call_operand.vmem [shape: f32[8,2], index: 4, kind: output, shape index: {0}]   ;;  %s1192_s2 = inlined_call_operand.vmem [shape: f32[1,2], index: 2, kind: input, shape index: {}]   ;;  %s1193_s5 = inlined_call_operand.vmem [shape: f32[8,128], index: 5, kind: output, shape index: {1}]  }
   0x1   :  { %v66_v0 = vld [vmem:[%s1188_s1 + $0xf8] sm:$0xff]  ;;  %697 = vset.pattern.permute.xlu1 %v703_v3  ;;  %698 = vset.pattern.permute.xlu0 %v703_v3  ;;  %v65_v5 = vld [vmem:[%s1188_s1 + $0xf0] sm:$0xff]  ;;  %v64_v9 = vld [vmem:[%s1188_s1 + $0xe8] sm:$0xff] }
   0x2   :  { %v98_v1 = vld [vmem:[%s1188_s1 + $0x1f8] sm:$0xff]  ;;  %551 = vmatprep.subr.mxu0 %v66_v0  ;;  %v97_v6 = vld [vmem:[%s1188_s1 + $0x1f0] sm:$0xff]  ;;  %v96_v10 = vld [vmem:[%s1188_s1 + $0x1e8] sm:$0xff] }
   0x3   :  { %v50_v2 = vld [vmem:[%s1188_s1 + $0x78] sm:$0xff]  ;;  %586 = vmatprep.subr.mxu1 %v98_v1  ;;  %v49_v7 = vld [vmem:[%s1188_s1 + $0x70] sm:$0xff]  ;;  %v48_v11 = vld [vmem:[%s1188_s1 + $0x68] sm:$0xff] }
   0x4   :  { %v82_v4 = vld [vmem:[%s1188_s1 + $0x178] sm:$0xff]  ;;  %552 = vmatpush3.msra.mxu0 %v50_v2  ;;  %v81_v8 = vld [vmem:[%s1188_s1 + $0x170] sm:$0xff]  ;;  %v80_v12 = vld [vmem:[%s1188_s1 + $0x168] sm:$0xff] }
   0x5   :  { %587 = vmatpush3.msra.mxu1 %v82_v4  ;;  %553 = vmatprep.subr.mxu0 %v65_v5  ;;  %v63_v13 = vld [vmem:[%s1188_s1 + $0xe0] sm:$0xff]  ;;  %v62_v17 = vld [vmem:[%s1188_s1 + $0xd8] sm:$0xff]  ;;  %v61_v21 = vld [vmem:[%s1188_s1 + $0xd0] sm:$0xff] }
   0x6   :  { %588 = vmatprep.subr.mxu1 %v97_v6  ;;  %554 = vmatpush3.msra.mxu0 %v49_v7  ;;  %v95_v14 = vld [vmem:[%s1188_s1 + $0x1e0] sm:$0xff]  ;;  %v94_v18 = vld [vmem:[%s1188_s1 + $0x1d8] sm:$0xff]  ;;  %v93_v22 = vld [vmem:[%s1188_s1 + $0x1d0] sm:$0xff] }
   0x7   :  { %589 = vmatpush3.msra.mxu1 %v81_v8  ;;  %555 = vmatprep.subr.mxu0 %v64_v9  ;;  %v47_v15 = vld [vmem:[%s1188_s1 + $0x60] sm:$0xff]  ;;  %v46_v19 = vld [vmem:[%s1188_s1 + $0x58] sm:$0xff]  ;;  %v45_v23 = vld [vmem:[%s1188_s1 + $0x50] sm:$0xff] }
   0x8   :  { %590 = vmatprep.subr.mxu1 %v96_v10  ;;  %v79_v16 = vld [vmem:[%s1188_s1 + $0x160] sm:$0xff]  ;;  %556 = vmatpush3.msra.mxu0 %v48_v11  ;;  %v78_v20 = vld [vmem:[%s1188_s1 + $0x158] sm:$0xff]  ;;  %v77_v24 = vld [vmem:[%s1188_s1 + $0x150] sm:$0xff] }
   0x9   :  { %591 = vmatpush3.msra.mxu1 %v80_v12  ;;  %557 = vmatprep.subr.mxu0 %v63_v13  ;;  %v60_v25 = vld [vmem:[%s1188_s1 + $0xc8] sm:$0xff]  ;;  %v59_v29 = vld [vmem:[%s1188_s1 + $0xc0] sm:$0xff]  ;;  %v58_v33 = vld [vmem:[%s1188_s1 + $0xb8] sm:$0xff] }
   0xa   :  { %592 = vmatprep.subr.mxu1 %v95_v14  ;;  %558 = vmatpush3.msra.mxu0 %v47_v15  ;;  %v92_v26 = vld [vmem:[%s1188_s1 + $0x1c8] sm:$0xff]  ;;  %v91_v30 = vld [vmem:[%s1188_s1 + $0x1c0] sm:$0xff]  ;;  %v90_v34 = vld [vmem:[%s1188_s1 + $0x1b8] sm:$0xff] }
   0xb   :  { %593 = vmatpush3.msra.mxu1 %v79_v16  ;;  %559 = vmatprep.subr.mxu0 %v62_v17  ;;  %v44_v27 = vld [vmem:[%s1188_s1 + $0x48] sm:$0xff]  ;;  %v43_v31 = vld [vmem:[%s1188_s1 + $0x40] sm:$0xff]  ;;  %v42_v35 = vld [vmem:[%s1188_s1 + $0x38] sm:$0xff] }
   0xc   :  { %594 = vmatprep.subr.mxu1 %v94_v18  ;;  %560 = vmatpush3.msra.mxu0 %v46_v19  ;;  %v76_v28 = vld [vmem:[%s1188_s1 + $0x148] sm:$0xff]  ;;  %v75_v32 = vld [vmem:[%s1188_s1 + $0x140] sm:$0xff]  ;;  %v74_v36 = vld [vmem:[%s1188_s1 + $0x138] sm:$0xff] }
   0xd   :  { %595 = vmatpush3.msra.mxu1 %v78_v20  ;;  %561 = vmatprep.subr.mxu0 %v61_v21  ;;  %v57_v37 = vld [vmem:[%s1188_s1 + $0xb0] sm:$0xff]  ;;  %v56_v41 = vld [vmem:[%s1188_s1 + $0xa8] sm:$0xff]  ;;  %v55_v45 = vld [vmem:[%s1188_s1 + $0xa0] sm:$0xff] }
   0xe   :  { %596 = vmatprep.subr.mxu1 %v93_v22  ;;  %562 = vmatpush3.msra.mxu0 %v45_v23  ;;  %v89_v38 = vld [vmem:[%s1188_s1 + $0x1b0] sm:$0xff]  ;;  %v88_v42 = vld [vmem:[%s1188_s1 + $0x1a8] sm:$0xff]  ;;  %v87_v46 = vld [vmem:[%s1188_s1 + $0x1a0] sm:$0xff] }
   0xf   :  { %597 = vmatpush3.msra.mxu1 %v77_v24  ;;  %563 = vmatprep.subr.mxu0 %v60_v25  ;;  %v41_v39 = vld [vmem:[%s1188_s1 + $0x30] sm:$0xff]  ;;  %v40_v43 = vld [vmem:[%s1188_s1 + $0x28] sm:$0xff]  ;;  %v39_v47 = vld [vmem:[%s1188_s1 + $0x20] sm:$0xff] }
  0x10   :  { %598 = vmatprep.subr.mxu1 %v92_v26  ;;  %564 = vmatpush3.msra.mxu0 %v44_v27  ;;  %v73_v40 = vld [vmem:[%s1188_s1 + $0x130] sm:$0xff]  ;;  %v72_v44 = vld [vmem:[%s1188_s1 + $0x128] sm:$0xff]  ;;  %v71_v48 = vld [vmem:[%s1188_s1 + $0x120] sm:$0xff] }
  0x11   :  { %599 = vmatpush3.msra.mxu1 %v76_v28  ;;  %565 = vmatprep.subr.mxu0 %v59_v29  ;;  %v54_v49 = vld [vmem:[%s1188_s1 + $0x98] sm:$0xff]  ;;  %v53_v53 = vld [vmem:[%s1188_s1 + $0x90] sm:$0xff]  ;;  %v52_v57 = vld [vmem:[%s1188_s1 + $0x88] sm:$0xff] }
  0x12   :  { %600 = vmatprep.subr.mxu1 %v91_v30  ;;  %566 = vmatpush3.msra.mxu0 %v43_v31  ;;  %v86_v50 = vld [vmem:[%s1188_s1 + $0x198] sm:$0xff]  ;;  %v85_v54 = vld [vmem:[%s1188_s1 + $0x190] sm:$0xff]  ;;  %v84_v58 = vld [vmem:[%s1188_s1 + $0x188] sm:$0xff] }
  0x13   :  { %601 = vmatpush3.msra.mxu1 %v75_v32  ;;  %567 = vmatprep.subr.mxu0 %v58_v33  ;;  %v38_v51 = vld [vmem:[%s1188_s1 + $0x18] sm:$0xff]  ;;  %v37_v55 = vld [vmem:[%s1188_s1 + $0x10] sm:$0xff]  ;;  %v36_v59 = vld [vmem:[%s1188_s1 + $0x8] sm:$0xff] }
  0x14   :  { %602 = vmatprep.subr.mxu1 %v90_v34  ;;  %568 = vmatpush3.msra.mxu0 %v42_v35  ;;  %v70_v52 = vld [vmem:[%s1188_s1 + $0x118] sm:$0xff]  ;;  %v69_v56 = vld [vmem:[%s1188_s1 + $0x110] sm:$0xff]  ;;  %v68_v60 = vld [vmem:[%s1188_s1 + $0x108] sm:$0xff] }
  0x15   :  { %603 = vmatpush3.msra.mxu1 %v74_v36  ;;  %569 = vmatprep.subr.mxu0 %v57_v37  ;;  %v51_v61 = vld [vmem:[%s1188_s1 + $0x80] sm:$0xff]  ;;  %v26_v0 = vld [vmem:[%s1189_s0 + $0x8] sm:$0xff]  ;;  %v28_v2 = vld [vmem:[%s1189_s0 + $0x18] sm:$0xff] }
  0x16   :  { %604 = vmatprep.subr.mxu1 %v89_v38  ;;  %570 = vmatpush3.msra.mxu0 %v41_v39  ;;  %v83_v62 = vld [vmem:[%s1188_s1 + $0x180] sm:$0xff]  ;;  %v27_v4 = vld [vmem:[%s1189_s0 + $0x10] sm:$0xff]  ;;  %v130_v5 = vld [vmem:[%s1188_s1 + $0x2f8] sm:$0xff] }
  0x17   :  { %605 = vmatpush3.msra.mxu1 %v73_v40  ;;  %571 = vmatprep.subr.mxu0 %v56_v41  ;;  %v35_v63 = vld [vmem:[%s1188_s1] sm:$0xff]  ;;  %v162_v6 = vld [vmem:[%s1188_s1 + $0x3f8] sm:$0xff]  ;;  %v129_v9 = vld [vmem:[%s1188_s1 + $0x2f0] sm:$0xff] }
  0x18   :  { %606 = vmatprep.subr.mxu1 %v88_v42  ;;  %572 = vmatpush3.msra.mxu0 %v40_v43  ;;  %v67_v1 = vld [vmem:[%s1188_s1 + $0x100] sm:$0xff]  ;;  %v114_v7 = vld [vmem:[%s1188_s1 + $0x278] sm:$0xff]  ;;  %v161_v10 = vld [vmem:[%s1188_s1 + $0x3f0] sm:$0xff] }
  0x19   :  { %607 = vmatpush3.msra.mxu1 %v72_v44  ;;  %573 = vmatprep.subr.mxu0 %v55_v45  ;;  %v25_v3 = vld [vmem:[%s1189_s0] sm:$0xff]  ;;  %v146_v8 = vld [vmem:[%s1188_s1 + $0x378] sm:$0xff]  ;;  %v113_v11 = vld [vmem:[%s1188_s1 + $0x270] sm:$0xff] }
  0x1a   :  { %608 = vmatprep.subr.mxu1 %v87_v46  ;;  %574 = vmatpush3.msra.mxu0 %v39_v47  ;;  %v145_v12 = vld [vmem:[%s1188_s1 + $0x370] sm:$0xff]  ;;  %v128_v13 = vld [vmem:[%s1188_s1 + $0x2e8] sm:$0xff]  ;;  %v127_v17 = vld [vmem:[%s1188_s1 + $0x2e0] sm:$0xff] }
  0x1b   :  { %609 = vmatpush3.msra.mxu1 %v71_v48  ;;  %575 = vmatprep.subr.mxu0 %v54_v49  ;;  %v160_v14 = vld [vmem:[%s1188_s1 + $0x3e8] sm:$0xff]  ;;  %v159_v18 = vld [vmem:[%s1188_s1 + $0x3e0] sm:$0xff]  ;;  %v126_v21 = vld [vmem:[%s1188_s1 + $0x2d8] sm:$0xff] }
  0x1c   :  { %610 = vmatprep.subr.mxu1 %v86_v50  ;;  %576 = vmatpush3.msra.mxu0 %v38_v51  ;;  %v112_v15 = vld [vmem:[%s1188_s1 + $0x268] sm:$0xff]  ;;  %v111_v19 = vld [vmem:[%s1188_s1 + $0x260] sm:$0xff]  ;;  %v158_v22 = vld [vmem:[%s1188_s1 + $0x3d8] sm:$0xff] }
  0x1d   :  { %611 = vmatpush3.msra.mxu1 %v70_v52  ;;  %577 = vmatprep.subr.mxu0 %v53_v53  ;;  %v144_v16 = vld [vmem:[%s1188_s1 + $0x368] sm:$0xff]  ;;  %v143_v20 = vld [vmem:[%s1188_s1 + $0x360] sm:$0xff]  ;;  %v110_v23 = vld [vmem:[%s1188_s1 + $0x258] sm:$0xff] }
  0x1e   :  { %612 = vmatprep.subr.mxu1 %v85_v54  ;;  %578 = vmatpush3.msra.mxu0 %v37_v55  ;;  %v142_v24 = vld [vmem:[%s1188_s1 + $0x358] sm:$0xff]  ;;  %v125_v25 = vld [vmem:[%s1188_s1 + $0x2d0] sm:$0xff]  ;;  %v124_v29 = vld [vmem:[%s1188_s1 + $0x2c8] sm:$0xff] }
  0x1f   :  { %613 = vmatpush3.msra.mxu1 %v69_v56  ;;  %579 = vmatprep.subr.mxu0 %v52_v57  ;;  %v157_v26 = vld [vmem:[%s1188_s1 + $0x3d0] sm:$0xff]  ;;  %v156_v30 = vld [vmem:[%s1188_s1 + $0x3c8] sm:$0xff]  ;;  %v123_v33 = vld [vmem:[%s1188_s1 + $0x2c0] sm:$0xff] }
  0x20   :  { %614 = vmatprep.subr.mxu1 %v84_v58  ;;  %580 = vmatpush3.msra.mxu0 %v36_v59  ;;  %v109_v27 = vld [vmem:[%s1188_s1 + $0x250] sm:$0xff]  ;;  %v108_v31 = vld [vmem:[%s1188_s1 + $0x248] sm:$0xff]  ;;  %v155_v34 = vld [vmem:[%s1188_s1 + $0x3c0] sm:$0xff] }
  0x21   :  { %615 = vmatpush3.msra.mxu1 %v68_v60  ;;  %581 = vmatprep.subr.mxu0 %v51_v61  ;;  %v141_v28 = vld [vmem:[%s1188_s1 + $0x350] sm:$0xff]  ;;  %v140_v32 = vld [vmem:[%s1188_s1 + $0x348] sm:$0xff]  ;;  %v107_v35 = vld [vmem:[%s1188_s1 + $0x240] sm:$0xff] }
  0x22   :  { %616 = vmatprep.subr.mxu1 %v83_v62  ;;  %582 = vmatpush3.msra.mxu0 %v35_v63  ;;  %v139_v36 = vld [vmem:[%s1188_s1 + $0x340] sm:$0xff]  ;;  %v122_v37 = vld [vmem:[%s1188_s1 + $0x2b8] sm:$0xff]  ;;  %v121_v41 = vld [vmem:[%s1188_s1 + $0x2b0] sm:$0xff] }
  0x23   :  { %228 = vmatprep.mubr.f32.mxu0 %v26_v0  ;;  %617 = vmatpush3.msra.mxu1 %v67_v1  ;;  %v154_v38 = vld [vmem:[%s1188_s1 + $0x3b8] sm:$0xff]  ;;  %v153_v42 = vld [vmem:[%s1188_s1 + $0x3b0] sm:$0xff]  ;;  %v120_v45 = vld [vmem:[%s1188_s1 + $0x2a8] sm:$0xff] }
  0x24   :  { %298 = vmatprep.mubr.f32.mxu1 %v28_v2  ;;  %229 = vmatmul.mubr.f32.vlgmr.msra.gmra.mxu0 %v25_v3  ;;  %v106_v39 = vld [vmem:[%s1188_s1 + $0x238] sm:$0xff]  ;;  %v105_v43 = vld [vmem:[%s1188_s1 + $0x230] sm:$0xff]  ;;  %v152_v46 = vld [vmem:[%s1188_s1 + $0x3a8] sm:$0xff] }
  0x25   :  { %299 = vmatmul.mubr.f32.vlgmr.msra.gmra.mxu1 %v27_v4  ;;  %621 = vmatprep.subr.mxu0 %v130_v5  ;;  %v138_v40 = vld [vmem:[%s1188_s1 + $0x338] sm:$0xff]  ;;  %v137_v44 = vld [vmem:[%s1188_s1 + $0x330] sm:$0xff]  ;;  %v104_v47 = vld [vmem:[%s1188_s1 + $0x228] sm:$0xff] }
  0x26   :  { %656 = vmatprep.subr.mxu1 %v162_v6  ;;  %622 = vmatpush3.msra.mxu0 %v114_v7  ;;  %v136_v48 = vld [vmem:[%s1188_s1 + $0x328] sm:$0xff]  ;;  %v119_v49 = vld [vmem:[%s1188_s1 + $0x2a0] sm:$0xff]  ;;  %v118_v53 = vld [vmem:[%s1188_s1 + $0x298] sm:$0xff] }
  0x27   :  { %657 = vmatpush3.msra.mxu1 %v146_v8  ;;  %623 = vmatprep.subr.mxu0 %v129_v9  ;;  %v151_v50 = vld [vmem:[%s1188_s1 + $0x3a0] sm:$0xff]  ;;  %v150_v54 = vld [vmem:[%s1188_s1 + $0x398] sm:$0xff]  ;;  %v117_v57 = vld [vmem:[%s1188_s1 + $0x290] sm:$0xff] }
  0x28   :  { %658 = vmatprep.subr.mxu1 %v161_v10  ;;  %624 = vmatpush3.msra.mxu0 %v113_v11  ;;  %v103_v51 = vld [vmem:[%s1188_s1 + $0x220] sm:$0xff]  ;;  %v102_v55 = vld [vmem:[%s1188_s1 + $0x218] sm:$0xff]  ;;  %v149_v58 = vld [vmem:[%s1188_s1 + $0x390] sm:$0xff]  ;;  %v704_v10 = vmov 0.0  }
  0x29   :  { %659 = vmatpush3.msra.mxu1 %v145_v12  ;;  %625 = vmatprep.subr.mxu0 %v128_v13  ;;  %v135_v52 = vld [vmem:[%s1188_s1 + $0x320] sm:$0xff]  ;;  %v134_v56 = vld [vmem:[%s1188_s1 + $0x318] sm:$0xff]  ;;  %v101_v59 = vld [vmem:[%s1188_s1 + $0x210] sm:$0xff]  ;;  %24 = vst.msk [vmem:[%s1191_s4] sm:$0xff] %vm23_vm0, %v704_v10 }
  0x2a   :  { %660 = vmatprep.subr.mxu1 %v160_v14  ;;  %626 = vmatpush3.msra.mxu0 %v112_v15  ;;  %v133_v60 = vld [vmem:[%s1188_s1 + $0x310] sm:$0xff]  ;;  %v116_v61 = vld [vmem:[%s1188_s1 + $0x288] sm:$0xff]  ;;  %v115_v1 = vld [vmem:[%s1188_s1 + $0x280] sm:$0xff] }
  0x2b   :  { %661 = vmatpush3.msra.mxu1 %v144_v16  ;;  %627 = vmatprep.subr.mxu0 %v127_v17  ;;  %v148_v62 = vld [vmem:[%s1188_s1 + $0x388] sm:$0xff]  ;;  %v147_v2 = vld [vmem:[%s1188_s1 + $0x380] sm:$0xff]  ;;  %v32_v6 = vld [vmem:[%s1189_s0 + $0x38] sm:$0xff] }
  0x2c   :  { %662 = vmatprep.subr.mxu1 %v159_v18  ;;  %628 = vmatpush3.msra.mxu0 %v111_v19  ;;  %v100_v63 = vld [vmem:[%s1188_s1 + $0x208] sm:$0xff]  ;;  %v99_v3 = vld [vmem:[%s1188_s1 + $0x200] sm:$0xff]  ;;  %v31_v8 = vld [vmem:[%s1189_s0 + $0x30] sm:$0xff] }
  0x2d   :  { %663 = vmatpush3.msra.mxu1 %v143_v20  ;;  %629 = vmatprep.subr.mxu0 %v126_v21  ;;  %v132_v0 = vld [vmem:[%s1188_s1 + $0x308] sm:$0xff]  ;;  %v131_v5 = vld [vmem:[%s1188_s1 + $0x300] sm:$0xff] }
  0x2e   :  { %664 = vmatprep.subr.mxu1 %v158_v22  ;;  %630 = vmatpush3.msra.mxu0 %v110_v23  ;;  %v30_v4 = vld [vmem:[%s1189_s0 + $0x28] sm:$0xff]  ;;  %v29_v7 = vld [vmem:[%s1189_s0 + $0x20] sm:$0xff] }
  0x2f   :  { %665 = vmatpush3.msra.mxu1 %v142_v24  ;;  %631 = vmatprep.subr.mxu0 %v125_v25  ;;  %v1146_v9 = vld [vmem:[%s1190_s3] sm:$0xff] }
  0x30   :  { %666 = vmatprep.subr.mxu1 %v157_v26  ;;  %632 = vmatpush3.msra.mxu0 %v109_v27  ;;  %v163_v25 = vld [vmem:[%s1191_s4] sm:$0xff]  ;;  %vm461_vm4 = vcmp.ge.s32.totalorder %v1146_v9, 0 }
  0x31   :  { %667 = vmatpush3.msra.mxu1 %v141_v28  ;;  %633 = vmatprep.subr.mxu0 %v124_v29  ;;  %v549_v28 = vld [vmem:[%s1192_s2] ss:$0 sm:$0xff] }
  0x32   :  { %668 = vmatprep.subr.mxu1 %v156_v30  ;;  %634 = vmatpush3.msra.mxu0 %v108_v31 }
  0x33   :  { %669 = vmatpush3.msra.mxu1 %v140_v32  ;;  %635 = vmatprep.subr.mxu0 %v123_v33  ;;  %v462_v32 = vlaneseq }
  0x34   :  { %670 = vmatprep.subr.mxu1 %v155_v34  ;;  %636 = vmatpush3.msra.mxu0 %v107_v35 }
  0x35   :  { %671 = vmatpush3.msra.mxu1 %v139_v36  ;;  %637 = vmatprep.subr.mxu0 %v122_v37  ;;  %v1173_v33 = vand.u32 127, %v462_v32 }
  0x36   :  { %672 = vmatprep.subr.mxu1 %v154_v38  ;;  %638 = vmatpush3.msra.mxu0 %v106_v39 }
  0x37   :  { %673 = vmatpush3.msra.mxu1 %v138_v40  ;;  %639 = vmatprep.subr.mxu0 %v121_v41  ;;  %vm531_vm8 = vcmp.eq.s32.totalorder %v1173_v33, 0 }
  0x38   :  { %674 = vmatprep.subr.mxu1 %v153_v42  ;;  %640 = vmatpush3.msra.mxu0 %v105_v43 }
  0x39   :  { %675 = vmatpush3.msra.mxu1 %v137_v44  ;;  %641 = vmatprep.subr.mxu0 %v120_v45 }
  0x3a   :  { %676 = vmatprep.subr.mxu1 %v152_v46  ;;  %642 = vmatpush3.msra.mxu0 %v104_v47 }
  0x3b   :  { %677 = vmatpush3.msra.mxu1 %v136_v48  ;;  %643 = vmatprep.subr.mxu0 %v119_v49 }
  0x3c   :  { %678 = vmatprep.subr.mxu1 %v151_v50  ;;  %644 = vmatpush3.msra.mxu0 %v103_v51 }
  0x3d   :  { %679 = vmatpush3.msra.mxu1 %v135_v52  ;;  %645 = vmatprep.subr.mxu0 %v118_v53 }
  0x3e   :  { %680 = vmatprep.subr.mxu1 %v150_v54  ;;  %646 = vmatpush3.msra.mxu0 %v102_v55 }
  0x3f   :  { %681 = vmatpush3.msra.mxu1 %v134_v56  ;;  %647 = vmatprep.subr.mxu0 %v117_v57 }
  0x40   :  { %682 = vmatprep.subr.mxu1 %v149_v58  ;;  %648 = vmatpush3.msra.mxu0 %v101_v59 }
  0x41   :  { %683 = vmatpush3.msra.mxu1 %v133_v60  ;;  %649 = vmatprep.subr.mxu0 %v116_v61 }
  0x42   :  { %684 = vmatprep.subr.mxu1 %v148_v62  ;;  %650 = vmatpush3.msra.mxu0 %v100_v63 }
  0x43   :  { %685 = vmatpush3.msra.mxu1 %v132_v0  ;;  %651 = vmatprep.subr.mxu0 %v115_v1 }
  0x44   :  { %686 = vmatprep.subr.mxu1 %v147_v2  ;;  %652 = vmatpush3.msra.mxu0 %v99_v3 }
  0x45   :  { %368 = vmatprep.mubr.f32.mxu0 %v30_v4  ;;  %687 = vmatpush3.msra.mxu1 %v131_v5 }
  0x46   :  { %438 = vmatprep.mubr.f32.mxu1 %v32_v6  ;;  %369 = vmatmul.mubr.f32.vlgmr.msra.gmra.mxu0 %v29_v7 }
  0x47   :  { %439 = vmatmul.mubr.f32.vlgmr.msra.gmra.mxu1 %v31_v8  ;;  %477 = vperm.xlu1 %697, %v1146_v9  }
  0xc2   :  { %v478_v44 = vpop.permute.xlu1 %477 }
  0xc3   :  { %vm479_vm2 = vcmp.eq.s32.totalorder %v1173_v33, %v478_v44 }
  0xe4   :  { %v583_v11 = vpop.f32.mrf.mxu0 }
  0xe5   :  { %v618_v12 = vpop.f32.mrf.mxu1 }
  0xe6   :  { %v584_v13 = vpop.f32.mrf.mxu0 }
  0xe7   :  { %v619_v14 = vpop.f32.mrf.mxu1  ;;  %v585_v15 = vadd.f32 %v584_v13, %v583_v11 }
  0xe8   :  { %v620_v16 = vadd.f32 %v619_v14, %v618_v12 }
  0xea   :  { %v301_v21 = vadd.f32 %v620_v16, %v585_v15  ;;  %v529_v16 = vshrl.u32 %v462_v32, 7 }
  0xec   :  { %vm530_vm7 = vcmp.eq.s32.totalorder %v529_v16, 0  ;;  %vm535_vm9 = vcmp.eq.s32.totalorder %v529_v16, 1 }
  0xed   :  { %vm532_vm10 = vmand %vm530_vm7, %vm531_vm8 }
  0xee   :  { %vm536_vm11 = vmand %vm535_vm9, %vm531_vm8 }
 0x106   :  { %v653_v17 = vpop.f32.mrf.mxu0 }
 0x107   :  { %v688_v18 = vpop.f32.mrf.mxu1 }
 0x108   :  { %v654_v19 = vpop.f32.mrf.mxu0 }
 0x109   :  { %v689_v20 = vpop.f32.mrf.mxu1  ;;  %v655_v22 = vadd.f32 %v654_v19, %v653_v17 }
 0x10a   :  { %v690_v24 = vadd.f32 %v689_v20, %v688_v18 }
 0x10b   :  { %v371_v23 = vadd.f32 %v655_v22, %v301_v21 }
 0x10d   :  { %v441_v26 = vadd.f32 %v690_v24, %v371_v23 }
 0x10f   :  { %v444_v27 = vadd.f32 %v441_v26, %v163_v25 }
 0x111   :  { %446 = vst.msk [vmem:[%s1191_s4] sm:$0xff] %vm23_vm0, %v444_v27 }
 0x118   :  { %v450_v29 = vld [vmem:[%s1191_s4] sm:$0xff] }
 0x119   :  { %v458_v30 = vadd.f32 %v549_v28, %v450_v29 }
 0x11b   :  { %v464_v31 = vsel %vm23_vm0, %v458_v30, -inf  ;;  %459 = vst.msk [vmem:[%s1191_s4] sm:$0xff] %vm23_vm0, %v458_v30  ;;  %v480_v48 = vsel %vm479_vm2, %v458_v30, 0.0 }
 0x11c   :  { %465 = vmax.xlane.f32.xlu0 %v464_v31  ;;  %v481_v49 = vsel %vm23_vm0, %v480_v48, 0.0 }
 0x1a5   :  { %v466_v34 = vpop.xlane.xlu0 %465 }
 0x1a6   :  { %v467_v35 = vsub.f32 %v458_v30, %v466_v34  ;;  %vm485_vm1 = vcmp.eq.f32.partialorder %v458_v30, %v466_v34 }
 0x1a7   :  { %v486_v36 = vsel %vm485_vm1, %v1173_v33, 2 }
 0x1a8   :  { %v468_v37 = vmul.f32 1.442695, %v467_v35  ;;  %v487_v38 = vsel %vm23_vm0, %v486_v36, 2147483647 }
 0x1a9   :  { %v489_v39 = vshra.s32 %v487_v38, 16  ;;  %v488_v43 = vand.u32 65535, %v487_v38 }
 0x1aa   :  { %699 = vpow2.f32 %v468_v37 }
 0x1ab   :  { %v491_v40 = vcvt.s32.f32 %v489_v39  ;;  %v490_v46 = vcvt.s32.f32 %v488_v43 }
 0x1ad   :  { %492 = vmin.xlane.f32.xlu0 %v491_v40 }
 0x1b7   :  { %v700_v41 = vpop.eup %699 }
 0x1b8   :  { %v470_v42 = vsel %vm23_vm0, %v700_v41, 0.0 }
 0x1b9   :  { %471 = vadd.xlane.f32.xlu1 %v470_v42 }
 0x236   :  { %v493_v45 = vpop.xlane.xlu0 %492 }
 0x237   :  { %vm494_vm3 = vcmp.eq.f32.partialorder %v491_v40, %v493_v45  ;;  %v499_v52 = vcvt.f32.s32 %v493_v45 }
 0x238   :  { %v495_v47 = vsel %vm494_vm3, %v490_v46, inf }
 0x239   :  { %496 = vmin.xlane.f32.xlu0 %v495_v47  ;;  %v500_v55 = vshll.u32 %v499_v52, 16 }
 0x23d   :  { %482 = vadd.xlane.f32.xlu0 %v481_v49 }
 0x242   :  { %v472_v50 = vpop.xlane.xlu1 %471 }
 0x243   :  { %701 = vlog2.f32 %v472_v50 }
 0x250   :  { %v702_v51 = vpop.eup %701 }
 0x251   :  { %v474_v53 = vmul.f32 0.6931472, %v702_v51 }
 0x253   :  { %v475_v58 = vadd.f32 %v474_v53, %v466_v34 }
 0x2c2   :  { %v497_v54 = vpop.xlane.xlu0 %496 }
 0x2c3   :  { %v498_v56 = vcvt.f32.s32 %v497_v54 }
 0x2c5   :  { %v501_v57 = vadd.s32 %v500_v55, %v498_v56 }
 0x2c6   :  { %v483_v59 = vpop.xlane.xlu0 %482 }
 0x2c7   :  { %v484_v60 = vsub.f32 %v475_v58, %v483_v59  ;;  %vm502_vm6 = vcmp.eq.s32.totalorder %v501_v57, %v1146_v9 }
 0x2c8   :  { %v550_v61 = vsel %vm502_vm6, 1.0, %v704_v10 }
 0x2c9   :  { %v505_v62 = vsel %vm461_vm4, %v484_v60, 0.0  ;;  %v517_v0 = vsel %vm461_vm4, %v550_v61, 0.0 }
 0x2ca   :  { %v507_v63 = vsel %vm506_vm5, %v505_v62, 0.0  ;;  %v518_v1 = vsel %vm506_vm5, %v517_v0, 0.0 }
 0x2cb   :  { %508 = vadd.xlane.f32.xlu0 %v507_v63 }
 0x2cf   :  { %519 = vadd.xlane.f32.xlu0 %v518_v1 }
 0x354   :  { %v509_v2 = vpop.xlane.xlu0 %508 }
 0x355   :  { %v510_v3 = vrot.slane %v509_v2, 4 }
 0x357   :  { %v511_v4 = vadd.f32 %v510_v3, %v509_v2 }
 0x358   :  { %v520_v5 = vpop.xlane.xlu0 %519 }
 0x359   :  { %v512_v6 = vrot.slane %v511_v4, 2  ;;  %v521_v7 = vrot.slane %v520_v5, 4 }
 0x35b   :  { %v522_v8 = vadd.f32 %v521_v7, %v520_v5  ;;  %v513_v11 = vadd.f32 %v512_v6, %v511_v4 }
 0x35d   :  { %v523_v12 = vrot.slane %v522_v8, 2  ;;  %v514_v13 = vrot.slane %v513_v11, 1 }
 0x35f   :  { %v524_v14 = vadd.f32 %v523_v12, %v522_v8  ;;  %v515_v9 = vadd.f32 %v514_v13, %v513_v11 }
 0x361   :  { %691 = vpush %v515_v9  ;;  %v525_v10 = vrot.slane %v524_v14, 1 }
 0x363   :  { %v526_v15 = vadd.f32 %v525_v10, %v524_v14 }
 0x365   :  { %693 = vpush %v526_v15 }
 0x392   :  { %s692_s2 = spop %691 }
 0x393   :  { %v533_v17 = vstv %s692_s2 }
 0x394   :  { %v534_v19 = vsel %vm532_vm10, %v533_v17, 0.0 }
 0x396   :  { %s694_s4 = spop %693 }
 0x397   :  { %v537_v18 = vstv %s694_s4 }
 0x398   :  { %v538_v20 = vsel %vm536_vm11, %v537_v18, 0.0 }
 0x399   :  { %v539_v21 = vadd.f32 %v538_v20, %v534_v19 }
 0x39b   :  { %540 = vst [vmem:[%s1193_s5] sm:$0xff] %v539_v21 }

</bundles_post_ra>
